<compile_context>
chip_gen: v6e
topology: v6e:2x2x1
jax: 0.10.0
libtpu: 0.0.40
codegen_flags: <defaults>
</compile_context>

<pallas_src>
import functools

import jax
import jax.numpy as jnp
from jax import lax
from jax.experimental import pallas as pl
from jax.experimental.pallas import tpu as pltpu


def _round_up(n, m):
    return ((n + m - 1) // m) * m


# Conservative per-kernel VMEM working-set budget that fits all generations
# (v7x has 64 MiB physical VMEM per TensorCore; leave headroom).
_VMEM_BUDGET = 40 << 20


def _vmem_bytes_needed(t_chunk, b_blk, i_dim, hp, mxu_itemsize, out_itemsize):
    """Estimate of the kernel's VMEM working set for block sizing."""
    x_blk = t_chunk * b_blk * i_dim * mxu_itemsize
    o_blk = t_chunk * b_blk * hp * out_itemsize
    bias = hp * 4
    z_blk = t_chunk * b_blk * hp * 4
    weights = (i_dim * hp + hp * hp) * mxu_itemsize
    h_carry = b_blk * hp * 4
    # x / bias / output blocks are double-buffered by the pipeline;
    # weights / z / h are single-buffered scratch.
    return 2 * (x_blk + o_blk + bias) + z_blk + weights + h_carry


def _rnn_chunk_kernel(x_ref, bias_ref, wih_hbm, whh_hbm, o_ref,
                      wih_vmem, whh_vmem, dma_sems, z_scratch, h_scratch,
                      *, t_chunk):
    """Grid step (b, c) = batch block b, chunk c of `t_chunk` timesteps.

    x_ref     : (T_CHUNK, Bblk, I)   mxu dtype  time-major inputs
    bias_ref  : (1, Hp)              f32        b_ih + b_hh
    wih_hbm   : (I, Hp)   HBM ref    mxu dtype  W_ih^T
    whh_hbm   : (Hp, Hp)  HBM ref    mxu dtype  W_hh^T
    o_ref     : (T_CHUNK, Bblk, Hp)  f32        per-step hiddens
    wih_vmem  : (I, Hp)   VMEM scratch           single-buffered weight
    whh_vmem  : (Hp, Hp)  VMEM scratch           single-buffered weight
    dma_sems  : DMA semaphores (2,)
    z_scratch : (T_CHUNK, Bblk, Hp)  f32        chunk input projection
    h_scratch : (Bblk, Hp)           f32        carried hidden state
    """
    # First time-chunk of this batch block: copy the weights ONCE into
    # persistent single-buffered VMEM scratch and reset the hidden carry.
    @pl.when(pl.program_id(1) == 0)
    def _():
        cp_ih = pltpu.make_async_copy(wih_hbm, wih_vmem, dma_sems.at[0])
        cp_hh = pltpu.make_async_copy(whh_hbm, whh_vmem, dma_sems.at[1])
        cp_ih.start()
        cp_hh.start()
        cp_ih.wait()
        cp_hh.wait()
        h_scratch[...] = jnp.zeros_like(h_scratch)

    # Whole-chunk input projection (no dependence on h): one batched MXU
    # matmul per chunk, fused into the kernel so Z never touches HBM.
    tc, bblk, _ = x_ref.shape
    x_blk = x_ref[...]
    z = jnp.dot(x_blk.reshape(tc * bblk, -1), wih_vmem[...],
                preferred_element_type=jnp.float32)
    z_scratch[...] = z.reshape(tc, bblk, -1) + bias_ref[...]

    def step(t, h):
        # TODO(synk): v7x MRB in-place accumulate (acc = z; acc += dot(h, W)).
        h_new = jnp.tanh(
            z_scratch[t]
            + jnp.dot(h.astype(whh_vmem.dtype), whh_vmem[...],
                      preferred_element_type=jnp.float32))
        o_ref[t] = h_new.astype(o_ref.dtype)
        return h_new

    # Fully unrolled serial recurrence (short, fixed trip count).
    h_final = lax.fori_loop(0, t_chunk, step, h_scratch[...], unroll=True)
    h_scratch[...] = h_final


def pipeline_rnn_forward(x, weight_ih, weight_hh, bias_ih, bias_hh, *,
                         t_chunk=None, num_batch_blocks=1,
                         mxu_dtype=jnp.float32, time_major_output=False):
    """x: (B, T, I) -> (B, T, H), matching torch RNNCell(tanh) recurrence.

    num_batch_blocks: set to 2 on v7x (2 TensorCores/chip) when B >= 16 to
    shard the independent batch rows across cores (harmless elsewhere).
    mxu_dtype: jnp.bfloat16 for production (halves HBM/VMEM streaming;
    f32 accumulation is kept); default f32 for exact parity.
    time_major_output: return (T, B, H) and skip the extra HBM transpose pass.
    """
    B, T, I = x.shape
    H = weight_ih.shape[0]
    f32 = jnp.float32

    nb = max(1, int(num_batch_blocks))
    Bp = _round_up(B, 8 * nb)          # sublane-dense batch, divisible by nb
    b_blk = Bp // nb
    Hp = _round_up(H, 128)             # lane-dense hidden
    mxu_itemsize = jnp.dtype(mxu_dtype).itemsize

    # ---- t_chunk: largest chunk that fits a generation-safe VMEM budget ----
    if t_chunk is None:
        t_chunk = max(1, min(T, 32))
        while (t_chunk > 1 and
               _vmem_bytes_needed(t_chunk, b_blk, I, Hp, mxu_itemsize, 4)
               > _VMEM_BUDGET):
            t_chunk //= 2
    t_chunk = max(1, min(int(t_chunk), T))
    Tp = _round_up(T, t_chunk)

    # ---- HBM operand prep (no Z_in materialization) -------------------------
    x_tm = jnp.transpose(x, (1, 0, 2)).astype(mxu_dtype)           # (T, B, I)
    x_tm = jnp.pad(x_tm, ((0, Tp - T), (0, Bp - B), (0, 0)))

    wih_t = jnp.zeros((I, Hp), mxu_dtype).at[:, :H].set(
        weight_ih.astype(mxu_dtype).T)                              # W_ih^T
    whh_t = jnp.zeros((Hp, Hp), mxu_dtype).at[:H, :H].set(
        weight_hh.astype(mxu_dtype).T)                              # W_hh^T
    bias2d = jnp.zeros((1, Hp), f32).at[0, :H].set(
        (bias_ih + bias_hh).astype(f32))

    # ---- VMEM limit: only raise it when the working set needs it -----------
    need = _vmem_bytes_needed(t_chunk, b_blk, I, Hp, mxu_itemsize, 4)
    vmem_limit = None
    if need > (12 << 20):   # default scoped limit: 16 MiB v5e / 32 MiB v6e,v7x
        cap = 56 << 20
        try:
            cap = int(pltpu.get_tpu_info().vmem_capacity_bytes * 7 // 8)
        except Exception:
            pass
        vmem_limit = min(need + need // 2 + (4 << 20), cap)

    cost = pl.CostEstimate(
        flops=2 * Tp * Bp * Hp * (I + Hp),
        transcendentals=Tp * Bp * Hp,
        bytes_accessed=(Tp * Bp * I * mxu_itemsize          # x stream
                        + Tp * Bp * Hp * 4                  # output stream
                        + (I * Hp + Hp * Hp) * mxu_itemsize # weights (once)
                        + Hp * 4),                          # bias
    )

    out_tm = pl.pallas_call(
        functools.partial(_rnn_chunk_kernel, t_chunk=t_chunk),
        out_shape=jax.ShapeDtypeStruct((Tp, Bp, Hp), f32),
        grid_spec=pltpu.PrefetchScalarGridSpec(
            num_scalar_prefetch=0,
            grid=(nb, Tp // t_chunk),
            in_specs=[
                pl.BlockSpec((t_chunk, b_blk, I), lambda b, c: (c, b, 0)),  # x
                pl.BlockSpec((1, Hp), lambda b, c: (0, 0)),                 # bias
                pl.BlockSpec(memory_space=pl.ANY),   # W_ih^T (HBM, copied once)
                pl.BlockSpec(memory_space=pl.ANY),   # W_hh^T (HBM, copied once)
            ],
            out_specs=pl.BlockSpec((t_chunk, b_blk, Hp), lambda b, c: (c, b, 0)),
            scratch_shapes=[
                pltpu.VMEM((I, Hp), mxu_dtype),            # W_ih^T resident
                pltpu.VMEM((Hp, Hp), mxu_dtype),           # W_hh^T resident
                pltpu.SemaphoreType.DMA((2,)),             # weight copy sems
                pltpu.VMEM((t_chunk, b_blk, Hp), f32),     # per-chunk z
                pltpu.VMEM((b_blk, Hp), f32),              # carried hidden
            ],
        ),
        compiler_params=pltpu.CompilerParams(
            # batch axis independent -> parallel (v7x megacore);
            # time-chunk axis carries h in scratch -> arbitrary.
            dimension_semantics=("parallel", "arbitrary"),
            vmem_limit_bytes=vmem_limit,
        ),
        cost_estimate=cost,
    )(x_tm, bias2d, wih_t, whh_t)

    out = out_tm[:T, :B, :H]                       # drop time/batch/lane pad
    if time_major_output:
        return out.astype(x.dtype)                 # (T, B, H), no extra HBM pass
    return jnp.transpose(out, (1, 0, 2)).astype(x.dtype)            # (B, T, H)


def _reference_forward(x, weight_ih, weight_hh, bias_ih, bias_hh):
    """Pure-JAX reference (lax.scan) matching torch RNNCell(tanh) semantics."""
    B = x.shape[0]
    H = weight_ih.shape[0]

    def step(h, x_t):
        h_new = jnp.tanh(x_t @ weight_ih.T + bias_ih + h @ weight_hh.T + bias_hh)
        return h_new, h_new

    h0 = jnp.zeros((B, H), dtype=jnp.float32)
    _, ys = lax.scan(step, h0, jnp.transpose(x, (1, 0, 2)))
    return jnp.transpose(ys, (1, 0, 2))


if __name__ == "__main__":
    key = jax.random.PRNGKey(0)
    B, T, I, H = 2, 8, 16, 32

    k_x, k_wih, k_whh, k_bih, k_bhh, k_x2 = jax.random.split(key, 6)
    # torch.nn.RNNCell init: U(-1/sqrt(H), 1/sqrt(H))
    bound = 1.0 / jnp.sqrt(jnp.float32(H))
    x = jax.random.normal(k_x, (B, T, I), dtype=jnp.float32)
    weight_ih = jax.random.uniform(k_wih, (H, I), jnp.float32, -bound, bound)
    weight_hh = jax.random.uniform(k_whh, (H, H), jnp.float32, -bound, bound)
    bias_ih = jax.random.uniform(k_bih, (H,), jnp.float32, -bound, bound)
    bias_hh = jax.random.uniform(k_bhh, (H,), jnp.float32, -bound, bound)

    ref = _reference_forward(x, weight_ih, weight_hh, bias_ih, bias_hh)

    # 1) Default f32 path (exact-parity mode).
    out = pipeline_rnn_forward(x, weight_ih, weight_hh, bias_ih, bias_hh)
    out = jax.block_until_ready(out)
    assert out.shape == (B, T, H)
    assert jnp.allclose(out, ref, atol=2e-4, rtol=2e-4), "f32 mismatch vs reference"

    # 2) bf16 MXU-operand path (production: halved HBM/VMEM streaming).
    out_bf16 = pipeline_rnn_forward(x, weight_ih, weight_hh, bias_ih, bias_hh,
                                    mxu_dtype=jnp.bfloat16)
    out_bf16 = jax.block_until_ready(out_bf16)
    assert out_bf16.shape == (B, T, H)
    assert jnp.allclose(out_bf16, ref, atol=5e-2, rtol=5e-2), \
        "bf16 mismatch vs reference"

    # 3) Batch-split grid axis (v7x megacore path); correct on 1-TC chips too.
    B2 = 16
    x2 = jax.random.normal(k_x2, (B2, T, I), dtype=jnp.float32)
    out2 = pipeline_rnn_forward(x2, weight_ih, weight_hh, bias_ih, bias_hh,
                                num_batch_blocks=2)
    out2 = jax.block_until_ready(out2)
    ref2 = _reference_forward(x2, weight_ih, weight_hh, bias_ih, bias_hh)
    assert out2.shape == (B2, T, H)
    assert jnp.allclose(out2, ref2, atol=2e-4, rtol=2e-4), \
        "batch-split mismatch vs reference"

    print("KERNEL_OK")
</pallas_src>

<mosaic_0001>
module attributes {stable_mosaic.version = 11 : i64} {
  func.func @_rnn_chunk_kernel(%arg0: i32, %arg1: i32, %arg2: memref<8x8x16xf32, #tpu.memory_space<vmem>>, %arg3: memref<1x128xf32, #tpu.memory_space<vmem>>, %arg4: memref<16x128xf32, #tpu.memory_space<any>>, %arg5: memref<128x128xf32, #tpu.memory_space<any>>, %arg6: memref<8x8x128xf32, #tpu.memory_space<vmem>>, %arg7: memref<16x128xf32, #tpu.memory_space<vmem>>, %arg8: memref<128x128xf32, #tpu.memory_space<vmem>>, %arg9: memref<2x!tpu.dma_semaphore, #tpu.memory_space<semaphore_mem>>, %arg10: memref<8x8x128xf32, #tpu.memory_space<vmem>>, %arg11: memref<8x128xf32, #tpu.memory_space<vmem>>) attributes {dimension_semantics = [#tpu.dimension_semantics<parallel>, #tpu.dimension_semantics<arbitrary>], iteration_bounds = array<i64: 1, 1>, scalar_prefetch = 0 : i64, scratch_operands = 5 : i64, tpu.core_type = #tpu.core_type<tc>, window_params = [{transform_indices = @transform_0, window_bounds = array<i64: 8, 8, 16>}, {pipeline_mode = #tpu.pipeline_mode<synchronous>, transform_indices = @transform_1, window_bounds = array<i64: 1, 128>}, {}, {}, {transform_indices = @transform_4, window_bounds = array<i64: 8, 8, 128>}]} {
    %c0_i32 = arith.constant 0 : i32
    %0 = arith.cmpi eq, %arg1, %c0_i32 : i32
    %1 = arith.extui %0 : i1 to i32
    %c0_i32_0 = arith.constant 0 : i32
    %2 = arith.cmpi ne, %1, %c0_i32_0 : i32
    scf.if %2 {
      %c0_i32_71 = arith.constant 0 : i32
      %103 = tpu.memref_slice %arg9[%c0_i32_71] : memref<2x!tpu.dma_semaphore, #tpu.memory_space<semaphore_mem>> -> memref<1x!tpu.dma_semaphore, #tpu.memory_space<semaphore_mem>>
      %104 = tpu.memref_squeeze %103 : memref<1x!tpu.dma_semaphore, #tpu.memory_space<semaphore_mem>> -> memref<!tpu.dma_semaphore, #tpu.memory_space<semaphore_mem>>
      tpu.enqueue_dma source(%arg4 : memref<16x128xf32, #tpu.memory_space<any>>) target(%arg7 : memref<16x128xf32, #tpu.memory_space<vmem>>) target_semaphore(%104 : memref<!tpu.dma_semaphore, #tpu.memory_space<semaphore_mem>>)
      %c1_i32_72 = arith.constant 1 : i32
      %105 = tpu.memref_slice %arg9[%c1_i32_72] : memref<2x!tpu.dma_semaphore, #tpu.memory_space<semaphore_mem>> -> memref<1x!tpu.dma_semaphore, #tpu.memory_space<semaphore_mem>>
      %106 = tpu.memref_squeeze %105 : memref<1x!tpu.dma_semaphore, #tpu.memory_space<semaphore_mem>> -> memref<!tpu.dma_semaphore, #tpu.memory_space<semaphore_mem>>
      tpu.enqueue_dma source(%arg5 : memref<128x128xf32, #tpu.memory_space<any>>) target(%arg8 : memref<128x128xf32, #tpu.memory_space<vmem>>) target_semaphore(%106 : memref<!tpu.dma_semaphore, #tpu.memory_space<semaphore_mem>>)
      %c0_i32_73 = arith.constant 0 : i32
      %107 = tpu.memref_slice %arg9[%c0_i32_73] : memref<2x!tpu.dma_semaphore, #tpu.memory_space<semaphore_mem>> -> memref<1x!tpu.dma_semaphore, #tpu.memory_space<semaphore_mem>>
      %108 = tpu.memref_squeeze %107 : memref<1x!tpu.dma_semaphore, #tpu.memory_space<semaphore_mem>> -> memref<!tpu.dma_semaphore, #tpu.memory_space<semaphore_mem>>
      tpu.wait_dma2 semaphore(%108 : memref<!tpu.dma_semaphore, #tpu.memory_space<semaphore_mem>>) src(%arg4 : memref<16x128xf32, #tpu.memory_space<any>>) dst(%arg7 : memref<16x128xf32, #tpu.memory_space<vmem>>)
      %c1_i32_74 = arith.constant 1 : i32
      %109 = tpu.memref_slice %arg9[%c1_i32_74] : memref<2x!tpu.dma_semaphore, #tpu.memory_space<semaphore_mem>> -> memref<1x!tpu.dma_semaphore, #tpu.memory_space<semaphore_mem>>
      %110 = tpu.memref_squeeze %109 : memref<1x!tpu.dma_semaphore, #tpu.memory_space<semaphore_mem>> -> memref<!tpu.dma_semaphore, #tpu.memory_space<semaphore_mem>>
      tpu.wait_dma2 semaphore(%110 : memref<!tpu.dma_semaphore, #tpu.memory_space<semaphore_mem>>) src(%arg5 : memref<128x128xf32, #tpu.memory_space<any>>) dst(%arg8 : memref<128x128xf32, #tpu.memory_space<vmem>>)
      %cst_75 = arith.constant 0.000000e+00 : f32
      %111 = vector.broadcast %cst_75 : f32 to vector<8x128xf32>
      %c0_76 = arith.constant 0 : index
      %c0_77 = arith.constant 0 : index
      %112 = vector.load %arg11[%c0_76, %c0_77] : memref<8x128xf32, #tpu.memory_space<vmem>>, vector<8x128xf32>
      tpu.vector_store %arg11[%c0_76, %c0_77], %111 {strides = array<i32>} : memref<8x128xf32, #tpu.memory_space<vmem>>, vector<8x128xf32>,
    } else {
    }
    %c0 = arith.constant 0 : index
    %c0_1 = arith.constant 0 : index
    %c0_2 = arith.constant 0 : index
    %3 = vector.load %arg2[%c0, %c0_1, %c0_2] : memref<8x8x16xf32, #tpu.memory_space<vmem>>, vector<8x8x16xf32>
    %4 = vector.shape_cast %3 : vector<8x8x16xf32> to vector<64x16xf32>
    %c0_3 = arith.constant 0 : index
    %c0_4 = arith.constant 0 : index
    %5 = vector.load %arg7[%c0_3, %c0_4] : memref<16x128xf32, #tpu.memory_space<vmem>>, vector<16x128xf32>
    %cst = arith.constant dense<0.000000e+00> : vector<64x128xf32>
    %6 = tpu.matmul %4, %5, %cst {dimension_numbers = #tpu.dot_dimension_numbers<[1], [0], [0], [1], [0, 0, 1, 1], [], []>} : vector<64x16xf32>, vector<16x128xf32>, vector<64x128xf32> -> vector<64x128xf32>
    %7 = vector.shape_cast %6 : vector<64x128xf32> to vector<8x8x128xf32>
    %c0_5 = arith.constant 0 : index
    %c0_6 = arith.constant 0 : index
    %8 = vector.load %arg3[%c0_5, %c0_6] : memref<1x128xf32, #tpu.memory_space<vmem>>, vector<1x128xf32>
    %9 = vector.shape_cast %8 : vector<1x128xf32> to vector<1x1x128xf32>
    %10 = vector.broadcast %9 : vector<1x1x128xf32> to vector<8x8x128xf32>
    %11 = arith.addf %7, %10 : vector<8x8x128xf32>
    %c0_7 = arith.constant 0 : index
    %c0_8 = arith.constant 0 : index
    %c0_9 = arith.constant 0 : index
    %12 = vector.load %arg10[%c0_7, %c0_8, %c0_9] : memref<8x8x128xf32, #tpu.memory_space<vmem>>, vector<8x8x128xf32>
    tpu.vector_store %arg10[%c0_7, %c0_8, %c0_9], %11 {strides = array<i32>} : memref<8x8x128xf32, #tpu.memory_space<vmem>>, vector<8x8x128xf32>,
    %c0_10 = arith.constant 0 : index
    %c0_11 = arith.constant 0 : index
    %13 = vector.load %arg11[%c0_10, %c0_11] : memref<8x128xf32, #tpu.memory_space<vmem>>, vector<8x128xf32>
    %c0_i32_12 = arith.constant 0 : i32
    %14 = arith.index_cast %c0_i32_12 : i32 to index
    %c0_13 = arith.constant 0 : index
    %c0_14 = arith.constant 0 : index
    %15 = vector.load %arg10[%14, %c0_13, %c0_14] : memref<8x8x128xf32, #tpu.memory_space<vmem>>, vector<1x8x128xf32>
    %16 = vector.shape_cast %15 : vector<1x8x128xf32> to vector<8x128xf32>
    %c0_15 = arith.constant 0 : index
    %c0_16 = arith.constant 0 : index
    %17 = vector.load %arg8[%c0_15, %c0_16] : memref<128x128xf32, #tpu.memory_space<vmem>>, vector<128x128xf32>
    %cst_17 = arith.constant dense<0.000000e+00> : vector<8x128xf32>
    %18 = tpu.matmul %13, %17, %cst_17 {dimension_numbers = #tpu.dot_dimension_numbers<[1], [0], [0], [1], [0, 0, 1, 1], [], []>} : vector<8x128xf32>, vector<128x128xf32>, vector<8x128xf32> -> vector<8x128xf32>
    %19 = arith.addf %16, %18 : vector<8x128xf32>
    %20 = math.tanh %19 : vector<8x128xf32>
    %21 = arith.index_cast %c0_i32_12 : i32 to index
    %c0_18 = arith.constant 0 : index
    %c0_19 = arith.constant 0 : index
    %22 = vector.load %arg6[%21, %c0_18, %c0_19] : memref<8x8x128xf32, #tpu.memory_space<vmem>>, vector<1x8x128xf32>
    %23 = vector.shape_cast %22 : vector<1x8x128xf32> to vector<8x128xf32>
    %24 = vector.shape_cast %20 : vector<8x128xf32> to vector<1x8x128xf32>
    tpu.vector_store %arg6[%21, %c0_18, %c0_19], %24 {strides = array<i32>} : memref<8x8x128xf32, #tpu.memory_space<vmem>>, vector<1x8x128xf32>,
    %c1_i32 = arith.constant 1 : i32
    %25 = arith.index_cast %c1_i32 : i32 to index
    %c0_20 = arith.constant 0 : index
    %c0_21 = arith.constant 0 : index
    %26 = vector.load %arg10[%25, %c0_20, %c0_21] : memref<8x8x128xf32, #tpu.memory_space<vmem>>, vector<1x8x128xf32>
    %27 = vector.shape_cast %26 : vector<1x8x128xf32> to vector<8x128xf32>
    %c0_22 = arith.constant 0 : index
    %c0_23 = arith.constant 0 : index
    %28 = vector.load %arg8[%c0_22, %c0_23] : memref<128x128xf32, #tpu.memory_space<vmem>>, vector<128x128xf32>
    %cst_24 = arith.constant dense<0.000000e+00> : vector<8x128xf32>
    %29 = tpu.matmul %20, %28, %cst_24 {dimension_numbers = #tpu.dot_dimension_numbers<[1], [0], [0], [1], [0, 0, 1, 1], [], []>} : vector<8x128xf32>, vector<128x128xf32>, vector<8x128xf32> -> vector<8x128xf32>
    %30 = arith.addf %27, %29 : vector<8x128xf32>
    %31 = math.tanh %30 : vector<8x128xf32>
    %32 = arith.index_cast %c1_i32 : i32 to index
    %c0_25 = arith.constant 0 : index
    %c0_26 = arith.constant 0 : index
    %33 = vector.load %arg6[%32, %c0_25, %c0_26] : memref<8x8x128xf32, #tpu.memory_space<vmem>>, vector<1x8x128xf32>
    %34 = vector.shape_cast %33 : vector<1x8x128xf32> to vector<8x128xf32>
    %35 = vector.shape_cast %31 : vector<8x128xf32> to vector<1x8x128xf32>
    tpu.vector_store %arg6[%32, %c0_25, %c0_26], %35 {strides = array<i32>} : memref<8x8x128xf32, #tpu.memory_space<vmem>>, vector<1x8x128xf32>,
    %c2_i32 = arith.constant 2 : i32
    %36 = arith.index_cast %c2_i32 : i32 to index
    %c0_27 = arith.constant 0 : index
    %c0_28 = arith.constant 0 : index
    %37 = vector.load %arg10[%36, %c0_27, %c0_28] : memref<8x8x128xf32, #tpu.memory_space<vmem>>, vector<1x8x128xf32>
    %38 = vector.shape_cast %37 : vector<1x8x128xf32> to vector<8x128xf32>
    %c0_29 = arith.constant 0 : index
    %c0_30 = arith.constant 0 : index
    %39 = vector.load %arg8[%c0_29, %c0_30] : memref<128x128xf32, #tpu.memory_space<vmem>>, vector<128x128xf32>
    %cst_31 = arith.constant dense<0.000000e+00> : vector<8x128xf32>
    %40 = tpu.matmul %31, %39, %cst_31 {dimension_numbers = #tpu.dot_dimension_numbers<[1], [0], [0], [1], [0, 0, 1, 1], [], []>} : vector<8x128xf32>, vector<128x128xf32>, vector<8x128xf32> -> vector<8x128xf32>
    %41 = arith.addf %38, %40 : vector<8x128xf32>
    %42 = math.tanh %41 : vector<8x128xf32>
    %43 = arith.index_cast %c2_i32 : i32 to index
    %c0_32 = arith.constant 0 : index
    %c0_33 = arith.constant 0 : index
    %44 = vector.load %arg6[%43, %c0_32, %c0_33] : memref<8x8x128xf32, #tpu.memory_space<vmem>>, vector<1x8x128xf32>
    %45 = vector.shape_cast %44 : vector<1x8x128xf32> to vector<8x128xf32>
    %46 = vector.shape_cast %42 : vector<8x128xf32> to vector<1x8x128xf32>
    tpu.vector_store %arg6[%43, %c0_32, %c0_33], %46 {strides = array<i32>} : memref<8x8x128xf32, #tpu.memory_space<vmem>>, vector<1x8x128xf32>,
    %c3_i32 = arith.constant 3 : i32
    %47 = arith.index_cast %c3_i32 : i32 to index
    %c0_34 = arith.constant 0 : index
    %c0_35 = arith.constant 0 : index
    %48 = vector.load %arg10[%47, %c0_34, %c0_35] : memref<8x8x128xf32, #tpu.memory_space<vmem>>, vector<1x8x128xf32>
    %49 = vector.shape_cast %48 : vector<1x8x128xf32> to vector<8x128xf32>
    %c0_36 = arith.constant 0 : index
    %c0_37 = arith.constant 0 : index
    %50 = vector.load %arg8[%c0_36, %c0_37] : memref<128x128xf32, #tpu.memory_space<vmem>>, vector<128x128xf32>
    %cst_38 = arith.constant dense<0.000000e+00> : vector<8x128xf32>
    %51 = tpu.matmul %42, %50, %cst_38 {dimension_numbers = #tpu.dot_dimension_numbers<[1], [0], [0], [1], [0, 0, 1, 1], [], []>} : vector<8x128xf32>, vector<128x128xf32>, vector<8x128xf32> -> vector<8x128xf32>
    %52 = arith.addf %49, %51 : vector<8x128xf32>
    %53 = math.tanh %52 : vector<8x128xf32>
    %54 = arith.index_cast %c3_i32 : i32 to index
    %c0_39 = arith.constant 0 : index
    %c0_40 = arith.constant 0 : index
    %55 = vector.load %arg6[%54, %c0_39, %c0_40] : memref<8x8x128xf32, #tpu.memory_space<vmem>>, vector<1x8x128xf32>
    %56 = vector.shape_cast %55 : vector<1x8x128xf32> to vector<8x128xf32>
    %57 = vector.shape_cast %53 : vector<8x128xf32> to vector<1x8x128xf32>
    tpu.vector_store %arg6[%54, %c0_39, %c0_40], %57 {strides = array<i32>} : memref<8x8x128xf32, #tpu.memory_space<vmem>>, vector<1x8x128xf32>,
    %c4_i32 = arith.constant 4 : i32
    %58 = arith.index_cast %c4_i32 : i32 to index
    %c0_41 = arith.constant 0 : index
    %c0_42 = arith.constant 0 : index
    %59 = vector.load %arg10[%58, %c0_41, %c0_42] : memref<8x8x128xf32, #tpu.memory_space<vmem>>, vector<1x8x128xf32>
    %60 = vector.shape_cast %59 : vector<1x8x128xf32> to vector<8x128xf32>
    %c0_43 = arith.constant 0 : index
    %c0_44 = arith.constant 0 : index
    %61 = vector.load %arg8[%c0_43, %c0_44] : memref<128x128xf32, #tpu.memory_space<vmem>>, vector<128x128xf32>
    %cst_45 = arith.constant dense<0.000000e+00> : vector<8x128xf32>
    %62 = tpu.matmul %53, %61, %cst_45 {dimension_numbers = #tpu.dot_dimension_numbers<[1], [0], [0], [1], [0, 0, 1, 1], [], []>} : vector<8x128xf32>, vector<128x128xf32>, vector<8x128xf32> -> vector<8x128xf32>
    %63 = arith.addf %60, %62 : vector<8x128xf32>
    %64 = math.tanh %63 : vector<8x128xf32>
    %65 = arith.index_cast %c4_i32 : i32 to index
    %c0_46 = arith.constant 0 : index
    %c0_47 = arith.constant 0 : index
    %66 = vector.load %arg6[%65, %c0_46, %c0_47] : memref<8x8x128xf32, #tpu.memory_space<vmem>>, vector<1x8x128xf32>
    %67 = vector.shape_cast %66 : vector<1x8x128xf32> to vector<8x128xf32>
    %68 = vector.shape_cast %64 : vector<8x128xf32> to vector<1x8x128xf32>
    tpu.vector_store %arg6[%65, %c0_46, %c0_47], %68 {strides = array<i32>} : memref<8x8x128xf32, #tpu.memory_space<vmem>>, vector<1x8x128xf32>,
    %c5_i32 = arith.constant 5 : i32
    %69 = arith.index_cast %c5_i32 : i32 to index
    %c0_48 = arith.constant 0 : index
    %c0_49 = arith.constant 0 : index
    %70 = vector.load %arg10[%69, %c0_48, %c0_49] : memref<8x8x128xf32, #tpu.memory_space<vmem>>, vector<1x8x128xf32>
    %71 = vector.shape_cast %70 : vector<1x8x128xf32> to vector<8x128xf32>
    %c0_50 = arith.constant 0 : index
    %c0_51 = arith.constant 0 : index
    %72 = vector.load %arg8[%c0_50, %c0_51] : memref<128x128xf32, #tpu.memory_space<vmem>>, vector<128x128xf32>
    %cst_52 = arith.constant dense<0.000000e+00> : vector<8x128xf32>
    %73 = tpu.matmul %64, %72, %cst_52 {dimension_numbers = #tpu.dot_dimension_numbers<[1], [0], [0], [1], [0, 0, 1, 1], [], []>} : vector<8x128xf32>, vector<128x128xf32>, vector<8x128xf32> -> vector<8x128xf32>
    %74 = arith.addf %71, %73 : vector<8x128xf32>
    %75 = math.tanh %74 : vector<8x128xf32>
    %76 = arith.index_cast %c5_i32 : i32 to index
    %c0_53 = arith.constant 0 : index
    %c0_54 = arith.constant 0 : index
    %77 = vector.load %arg6[%76, %c0_53, %c0_54] : memref<8x8x128xf32, #tpu.memory_space<vmem>>, vector<1x8x128xf32>
    %78 = vector.shape_cast %77 : vector<1x8x128xf32> to vector<8x128xf32>
    %79 = vector.shape_cast %75 : vector<8x128xf32> to vector<1x8x128xf32>
    tpu.vector_store %arg6[%76, %c0_53, %c0_54], %79 {strides = array<i32>} : memref<8x8x128xf32, #tpu.memory_space<vmem>>, vector<1x8x128xf32>,
    %c6_i32 = arith.constant 6 : i32
    %80 = arith.index_cast %c6_i32 : i32 to index
    %c0_55 = arith.constant 0 : index
    %c0_56 = arith.constant 0 : index
    %81 = vector.load %arg10[%80, %c0_55, %c0_56] : memref<8x8x128xf32, #tpu.memory_space<vmem>>, vector<1x8x128xf32>
    %82 = vector.shape_cast %81 : vector<1x8x128xf32> to vector<8x128xf32>
    %c0_57 = arith.constant 0 : index
    %c0_58 = arith.constant 0 : index
    %83 = vector.load %arg8[%c0_57, %c0_58] : memref<128x128xf32, #tpu.memory_space<vmem>>, vector<128x128xf32>
    %cst_59 = arith.constant dense<0.000000e+00> : vector<8x128xf32>
    %84 = tpu.matmul %75, %83, %cst_59 {dimension_numbers = #tpu.dot_dimension_numbers<[1], [0], [0], [1], [0, 0, 1, 1], [], []>} : vector<8x128xf32>, vector<128x128xf32>, vector<8x128xf32> -> vector<8x128xf32>
    %85 = arith.addf %82, %84 : vector<8x128xf32>
    %86 = math.tanh %85 : vector<8x128xf32>
    %87 = arith.index_cast %c6_i32 : i32 to index
    %c0_60 = arith.constant 0 : index
    %c0_61 = arith.constant 0 : index
    %88 = vector.load %arg6[%87, %c0_60, %c0_61] : memref<8x8x128xf32, #tpu.memory_space<vmem>>, vector<1x8x128xf32>
    %89 = vector.shape_cast %88 : vector<1x8x128xf32> to vector<8x128xf32>
    %90 = vector.shape_cast %86 : vector<8x128xf32> to vector<1x8x128xf32>
    tpu.vector_store %arg6[%87, %c0_60, %c0_61], %90 {strides = array<i32>} : memref<8x8x128xf32, #tpu.memory_space<vmem>>, vector<1x8x128xf32>,
    %c7_i32 = arith.constant 7 : i32
    %91 = arith.index_cast %c7_i32 : i32 to index
    %c0_62 = arith.constant 0 : index
    %c0_63 = arith.constant 0 : index
    %92 = vector.load %arg10[%91, %c0_62, %c0_63] : memref<8x8x128xf32, #tpu.memory_space<vmem>>, vector<1x8x128xf32>
    %93 = vector.shape_cast %92 : vector<1x8x128xf32> to vector<8x128xf32>
    %c0_64 = arith.constant 0 : index
    %c0_65 = arith.constant 0 : index
    %94 = vector.load %arg8[%c0_64, %c0_65] : memref<128x128xf32, #tpu.memory_space<vmem>>, vector<128x128xf32>
    %cst_66 = arith.constant dense<0.000000e+00> : vector<8x128xf32>
    %95 = tpu.matmul %86, %94, %cst_66 {dimension_numbers = #tpu.dot_dimension_numbers<[1], [0], [0], [1], [0, 0, 1, 1], [], []>} : vector<8x128xf32>, vector<128x128xf32>, vector<8x128xf32> -> vector<8x128xf32>
    %96 = arith.addf %93, %95 : vector<8x128xf32>
    %97 = math.tanh %96 : vector<8x128xf32>
    %98 = arith.index_cast %c7_i32 : i32 to index
    %c0_67 = arith.constant 0 : index
    %c0_68 = arith.constant 0 : index
    %99 = vector.load %arg6[%98, %c0_67, %c0_68] : memref<8x8x128xf32, #tpu.memory_space<vmem>>, vector<1x8x128xf32>
    %100 = vector.shape_cast %99 : vector<1x8x128xf32> to vector<8x128xf32>
    %101 = vector.shape_cast %97 : vector<8x128xf32> to vector<1x8x128xf32>
    tpu.vector_store %arg6[%98, %c0_67, %c0_68], %101 {strides = array<i32>} : memref<8x8x128xf32, #tpu.memory_space<vmem>>, vector<1x8x128xf32>,
    %c8_i32 = arith.constant 8 : i32
    %c0_69 = arith.constant 0 : index
    %c0_70 = arith.constant 0 : index
    %102 = vector.load %arg11[%c0_69, %c0_70] : memref<8x128xf32, #tpu.memory_space<vmem>>, vector<8x128xf32>
    tpu.vector_store %arg11[%c0_69, %c0_70], %97 {strides = array<i32>} : memref<8x128xf32, #tpu.memory_space<vmem>>, vector<8x128xf32>,
    return
  }
  func.func @transform_0(%arg0: i32, %arg1: i32) -> (i32, i32, i32) {
    %c0_i32 = arith.constant 0 : i32
    %c0_i32_0 = arith.constant 0 : i32
    return %arg1, %arg0, %c0_i32 : i32, i32, i32
  }
  func.func @transform_1(%arg0: i32, %arg1: i32) -> (i32, i32) {
    %c0_i32 = arith.constant 0 : i32
    %c0_i32_0 = arith.constant 0 : i32
    %c0_i32_1 = arith.constant 0 : i32
    return %c0_i32, %c0_i32_0 : i32, i32
  }
  func.func @transform_4(%arg0: i32, %arg1: i32) -> (i32, i32, i32) {
    %c0_i32 = arith.constant 0 : i32
    %c0_i32_0 = arith.constant 0 : i32
    return %arg1, %arg0, %c0_i32 : i32, i32, i32
  }
}

</mosaic_0001>

<bundles_post_ra>
// kernel: tpu_custom_call.1
= control target key start
LH: loop header
LB: loop body
LE: loop exit
PB: predicated region body
PF: predicated region fallthrough
CT: control target
= control target key end

     0   :  { %9 = vsyncpa [#allocation8], 0  ;;  %s1948_s0 = inlined_call_operand.hbm [shape: f32[8,8,16], index: 0, kind: input, shape index: {}]   ;;  %s1949_s1 = inlined_call_operand.vmem [shape: f32[1,128], index: 1, kind: input, shape index: {}]   ;;  %s1950_s2 = inlined_call_operand.hbm [shape: f32[16,128], index: 2, kind: input, shape index: {}]   ;;  %s1951_s3 = inlined_call_operand.hbm [shape: f32[128,128], index: 3, kind: input, shape index: {}]   ;;  %s1952_s4 = inlined_call_operand.hbm [shape: f32[8,8,128], index: 4, kind: output, shape index: {}]  }
   0x1   :  { %10 = vsyncpa [#allocation9], 0  ;;  %s1556_s15 = smov [#allocation7]  }
   0x2   :  { %s16_s16 = sshll.u32 %s1556_s15, 4  ;;  %s17_s16 = int_to_ptr.vmem [resolvable:$true] %s16_s16 }
   0x3   :  { %s1476_s17 = scalar_lea.vmem %s17_s16, 1024  ;;  %p1481_p1 = scmp.lt.s32.totalorder %s17_s16, %s17_s16 }
   0x4   :  { %p1477_p0 = scmp.ne.s32.totalorder %s17_s16, %s1476_s17  ;;  %p1482_p2 = scmp.lt.s32.totalorder %s1476_s17, %s1476_s17 }
   0x6   :  { %p1483_p3 = por %p1482_p2, %p1481_p1 }
   0x8   :  { %p1484_p4 = pnand %p1483_p3, %p1477_p0 }
   0xa   :  { %1487 = shalt.err (!%p1484_p4)
}
   0xb   :  { %s1557_s18 = smov 128   ;;  %s1558_s19 = smov 8  }
   0xc   :  { %22 = dma.hbm_to_vmem [thread:$0]  %s1948_s0, 1024, %s17_s16, [#allocation8], %s1557_s18, %s1557_s18, %s1558_s19  }
   0xd   :  { %1548 = dma.done.wait [#allocation8], 1024  }
   0xe   :  { %1549 = vsyncadd [#allocation8], 4294966272  ;;  %s1559_s22 = smov [#allocation2]   ;;  %s1560_s24 = smov [#allocation3]  }
   0xf   :  { %s39_s23 = sshll.u32 %s1559_s22, 4  ;;  %s51_s25 = sshll.u32 %s1560_s24, 4  ;;  %s40_s23 = int_to_ptr.vmem [resolvable:$true] %s39_s23  ;;  %s52_s25 = int_to_ptr.vmem [resolvable:$true] %s51_s25 }
  0x10   :  { %s1496_s26 = scalar_lea.vmem %s40_s23, 256  ;;  %p1501_p6 = scmp.lt.s32.totalorder %s40_s23, %s40_s23 }
  0x11   :  { %p1497_p5 = scmp.ne.s32.totalorder %s40_s23, %s1496_s26  ;;  %p1502_p7 = scmp.lt.s32.totalorder %s1496_s26, %s1496_s26 }
  0x13   :  { %p1503_p8 = por %p1502_p7, %p1501_p6 }
  0x15   :  { %p1504_p9 = pnand %p1503_p8, %p1497_p5 }
  0x17   :  { %1507 = shalt.err (!%p1504_p9)  }
  0x18   :  { %42 = dma.hbm_to_vmem [thread:$0]  %s1950_s2, 256, %s40_s23, [#allocation4] }
  0x19   :  { %s1516_s0 = scalar_lea.vmem %s52_s25, 2048  ;;  %p1521_p11 = scmp.lt.s32.totalorder %s52_s25, %s52_s25 }
  0x1a   :  { %p1517_p10 = scmp.ne.s32.totalorder %s52_s25, %s1516_s0  ;;  %p1522_p12 = scmp.lt.s32.totalorder %s1516_s0, %s1516_s0 }
  0x1c   :  { %p1523_p13 = por %p1522_p12, %p1521_p11 }
  0x1e   :  { %p1524_p0 = pnand %p1523_p13, %p1517_p10 }
  0x20   :  { %1527 = shalt.err (!%p1524_p0)  }
  0x21   :  { %54 = dma.hbm_to_vmem [thread:$0]  %s1951_s3, 2048, %s52_s25, [#allocation4 + $0x1] }
  0x22   :  { %1550 = dma.done.wait [#allocation4], 256 }
  0x23   :  { %1551 = vsyncadd [#allocation4], 4294967040 }
  0x24   :  { %1552 = dma.done.wait [#allocation4 + $0x1], 2048 }
  0x25   :  { %1553 = vsyncadd [#allocation4 + $0x1], 4294965248  ;;  %v1561_v0 = vmov 0.0   ;;  %vm1562_vm0 = vmmov 0   ;;  %v1604_v1 = vld [vmem:[#allocation3 + $0x78] sm:$0xff]  ;;  %v1606_v2 = vld [vmem:[#allocation3 + $0x70] sm:$0xff] }
  0x26   :  { %1164 = vmatprep.subr.mxu1 %v1561_v0  ;;  %1196 = vmatprep.mubr.msk.f32.mxu1 %vm1562_vm0, %v1561_v0  ;;  %v1610_v3 = vld [vmem:[#allocation3 + $0x68] sm:$0xff]  ;;  %v71_v4 = vld [vmem:[#allocation2 + $0x8] sm:$0xff]  ;;  %v1614_v5 = vld [vmem:[#allocation3 + $0x60] sm:$0xff]  ;;  %vm72_vm1 = vcmask 130048  }
  0x27   :  { %1165 = vmatpush3.msra.mxu1 %v1604_v1  ;;  %1148 = vmatprep.subr.mxu0 %v71_v4  ;;  %v70_v6 = vld [vmem:[#allocation2] sm:$0xff]  ;;  %v62_v7 = vld [vmem:[#allocation7] sm:$0xff]  ;;  %v1618_v8 = vld [vmem:[#allocation3 + $0x58] sm:$0xff] }
  0x28   :  { %1166 = vmatprep.subr.mxu1 %v1561_v0  ;;  %1149 = vmatpush3.msra.mxu0 %v71_v4  ;;  %v63_v9 = vld [vmem:[#allocation7 + $0x8] sm:$0xff]  ;;  %v1622_v10 = vld [vmem:[#allocation3 + $0x50] sm:$0xff]  ;;  %v1634_v12 = vld [vmem:[#allocation3 + $0x40] sm:$0xff] }
  0x29   :  { %1167 = vmatpush3.msra.mxu1 %v1606_v2  ;;  %1150 = vmatprep.subr.mxu0 %v70_v6  ;;  %v1628_v11 = vld [vmem:[#allocation3 + $0x48] sm:$0xff]  ;;  %v1640_v13 = vld [vmem:[#allocation3 + $0x38] sm:$0xff]  ;;  %v1646_v14 = vld [vmem:[#allocation3 + $0x30] sm:$0xff] }
  0x2a   :  { %1168 = vmatprep.subr.mxu1 %v1561_v0  ;;  %1151 = vmatpush3.msra.mxu0 %v70_v6  ;;  %v1652_v15 = vld [vmem:[#allocation3 + $0x28] sm:$0xff]  ;;  %v1658_v16 = vld [vmem:[#allocation3 + $0x20] sm:$0xff]  ;;  %v1664_v17 = vld [vmem:[#allocation3 + $0x18] sm:$0xff] }
  0x2b   :  { %1169 = vmatpush3.msra.mxu1 %v1610_v3  ;;  %1152 = vmatprep.mubr.msk.f32.mxu0 %vm72_vm1, %v62_v7  ;;  %v1670_v18 = vld [vmem:[#allocation3 + $0x10] sm:$0xff]  ;;  %v1676_v19 = vld [vmem:[#allocation3 + $0x8] sm:$0xff]  ;;  %v1682_v20 = vld [vmem:[#allocation3] sm:$0xff] }
  0x2c   :  { %1170 = vmatprep.subr.mxu1 %v1561_v0  ;;  %1153 = vmatmul.mubr.msk.f32.vlgmr.msra.gmra.mxu0 %vm72_vm1, %v63_v9  ;;  %v64_v21 = vld [vmem:[#allocation7 + $0x10] sm:$0xff]  ;;  %v65_v22 = vld [vmem:[#allocation7 + $0x18] sm:$0xff]  ;;  %v66_v23 = vld [vmem:[#allocation7 + $0x20] sm:$0xff] }
  0x2d   :  { %1171 = vmatpush3.msra.mxu1 %v1614_v5  ;;  %1199 = vmatprep.subr.mxu0 %v1561_v0  ;;  %v67_v24 = vld [vmem:[#allocation7 + $0x28] sm:$0xff]  ;;  %v68_v25 = vld [vmem:[#allocation7 + $0x30] sm:$0xff]  ;;  %v69_v26 = vld [vmem:[#allocation7 + $0x38] sm:$0xff] }
  0x2e   :  { %1172 = vmatprep.subr.mxu1 %v1561_v0  ;;  %1200 = vmatpush3.msra.mxu0 %v1604_v1  ;;  %v1749_v28 = vld [vmem:[%s1949_s1] ss:$0 sm:$0xff]  ;;  %s1563_s1 = smov [#allocation10]  }
  0x2f   :  { %1173 = vmatpush3.msra.mxu1 %v1618_v8  ;;  %1201 = vmatprep.subr.mxu0 %v1561_v0  ;;  %s966_s5 = sshll.u32 %s1563_s1, 4  ;;  %s967_s5 = int_to_ptr.vmem [resolvable:$true] %s966_s5 }
  0x30   :  { %1174 = vmatprep.subr.mxu1 %v1561_v0  ;;  %1202 = vmatpush3.msra.mxu0 %v1606_v2  ;;  %s1528_s6 = scalar_lea.vmem %s967_s5, 1024  ;;  %p1533_p2 = scmp.lt.s32.totalorder %s967_s5, %s967_s5 }
  0x31   :  { %1175 = vmatpush3.msra.mxu1 %v1622_v10  ;;  %1203 = vmatprep.subr.mxu0 %v1561_v0  ;;  %p1529_p1 = scmp.ne.s32.totalorder %s967_s5, %s1528_s6  ;;  %p1534_p3 = scmp.lt.s32.totalorder %s1528_s6, %s1528_s6 }
  0x32   :  { %1176 = vmatprep.subr.mxu1 %v1561_v0  ;;  %1204 = vmatpush3.msra.mxu0 %v1610_v3 }
  0x33   :  { %1177 = vmatpush3.msra.mxu1 %v1628_v11  ;;  %1205 = vmatprep.subr.mxu0 %v1561_v0  ;;  %p1535_p4 = por %p1534_p3, %p1533_p2 }
  0x34   :  { %1178 = vmatprep.subr.mxu1 %v1561_v0  ;;  %1206 = vmatpush3.msra.mxu0 %v1614_v5 }
  0x35   :  { %1179 = vmatpush3.msra.mxu1 %v1634_v12  ;;  %1207 = vmatprep.subr.mxu0 %v1561_v0  ;;  %p1536_p5 = pnand %p1535_p4, %p1529_p1 }
  0x36   :  { %1180 = vmatprep.subr.mxu1 %v1561_v0  ;;  %1208 = vmatpush3.msra.mxu0 %v1618_v8 }
  0x37   :  { %1181 = vmatpush3.msra.mxu1 %v1640_v13  ;;  %1209 = vmatprep.subr.mxu0 %v1561_v0 }
  0x38   :  { %1182 = vmatprep.subr.mxu1 %v1561_v0  ;;  %1210 = vmatpush3.msra.mxu0 %v1622_v10 }
  0x39   :  { %1183 = vmatpush3.msra.mxu1 %v1646_v14  ;;  %1211 = vmatprep.subr.mxu0 %v1561_v0 }
  0x3a   :  { %1184 = vmatprep.subr.mxu1 %v1561_v0  ;;  %1212 = vmatpush3.msra.mxu0 %v1628_v11 }
  0x3b   :  { %1185 = vmatpush3.msra.mxu1 %v1652_v15  ;;  %1213 = vmatprep.subr.mxu0 %v1561_v0 }
  0x3c   :  { %1186 = vmatprep.subr.mxu1 %v1561_v0  ;;  %1214 = vmatpush3.msra.mxu0 %v1634_v12 }
  0x3d   :  { %1187 = vmatpush3.msra.mxu1 %v1658_v16  ;;  %1215 = vmatprep.subr.mxu0 %v1561_v0 }
  0x3e   :  { %1188 = vmatprep.subr.mxu1 %v1561_v0  ;;  %1216 = vmatpush3.msra.mxu0 %v1640_v13 }
  0x3f   :  { %1189 = vmatpush3.msra.mxu1 %v1664_v17  ;;  %1217 = vmatprep.subr.mxu0 %v1561_v0 }
  0x40   :  { %1190 = vmatprep.subr.mxu1 %v1561_v0  ;;  %1218 = vmatpush3.msra.mxu0 %v1646_v14 }
  0x41   :  { %1191 = vmatpush3.msra.mxu1 %v1670_v18  ;;  %1219 = vmatprep.subr.mxu0 %v1561_v0 }
  0x42   :  { %1192 = vmatprep.subr.mxu1 %v1561_v0  ;;  %1220 = vmatpush3.msra.mxu0 %v1652_v15 }
  0x43   :  { %1193 = vmatpush3.msra.mxu1 %v1676_v19  ;;  %1221 = vmatprep.subr.mxu0 %v1561_v0 }
  0x44   :  { %1194 = vmatprep.subr.mxu1 %v1561_v0  ;;  %1222 = vmatpush3.msra.mxu0 %v1658_v16 }
  0x45   :  { %1195 = vmatpush3.msra.mxu1 %v1682_v20  ;;  %1223 = vmatprep.subr.mxu0 %v1561_v0 }
  0x46   :  { %1197 = vmatmul.mubr.f32.vlgmr.msra.gmra.mxu1 %v1561_v0  ;;  %1234 = vmatprep.subr.mxu1 %v1561_v0 }
  0x47   :  { %1235 = vmatpush3.msra.mxu1 %v1604_v1  ;;  %1224 = vmatpush3.msra.mxu0 %v1664_v17 }
  0x48   :  { %1236 = vmatprep.subr.mxu1 %v1561_v0  ;;  %1225 = vmatprep.subr.mxu0 %v1561_v0 }
  0x49   :  { %1237 = vmatpush3.msra.mxu1 %v1606_v2  ;;  %1226 = vmatpush3.msra.mxu0 %v1670_v18 }
  0x4a   :  { %1238 = vmatprep.subr.mxu1 %v1561_v0  ;;  %1227 = vmatprep.subr.mxu0 %v1561_v0 }
  0x4b   :  { %1239 = vmatpush3.msra.mxu1 %v1610_v3  ;;  %1228 = vmatpush3.msra.mxu0 %v1676_v19 }
  0x4c   :  { %1240 = vmatprep.subr.mxu1 %v1561_v0  ;;  %1229 = vmatprep.subr.mxu0 %v1561_v0 }
  0x4d   :  { %1241 = vmatpush3.msra.mxu1 %v1614_v5  ;;  %1230 = vmatpush3.msra.mxu0 %v1682_v20 }
  0x4e   :  { %1242 = vmatprep.subr.mxu1 %v1561_v0  ;;  %1266 = vmatprep.mubr.msk.f32.mxu1 %vm1562_vm0, %v1561_v0 }
  0x4f   :  { %1243 = vmatpush3.msra.mxu1 %v1618_v8  ;;  %1269 = vmatprep.subr.mxu0 %v1561_v0 }
  0x50   :  { %1244 = vmatprep.subr.mxu1 %v1561_v0  ;;  %1155 = vmatprep.mubr.msk.f32.mxu0 %vm72_vm1, %v64_v21 }
  0x51   :  { %1245 = vmatpush3.msra.mxu1 %v1622_v10  ;;  %1156 = vmatmul.mubr.msk.f32.gmra.mxu0 %vm72_vm1, %v65_v22 }
  0x52   :  { %1246 = vmatprep.subr.mxu1 %v1561_v0  ;;  %1158 = vmatprep.mubr.msk.f32.mxu0 %vm72_vm1, %v66_v23 }
  0x53   :  { %1247 = vmatpush3.msra.mxu1 %v1628_v11 }
  0x54   :  { %1248 = vmatprep.subr.mxu1 %v1561_v0 }
  0x55   :  { %1249 = vmatpush3.msra.mxu1 %v1634_v12  ;;  %1159 = vmatmul.mubr.msk.f32.gmra.mxu0 %vm72_vm1, %v67_v24 }
  0x56   :  { %1250 = vmatprep.subr.mxu1 %v1561_v0  ;;  %1161 = vmatprep.mubr.msk.f32.mxu0 %vm72_vm1, %v68_v25 }
  0x57   :  { %1251 = vmatpush3.msra.mxu1 %v1640_v13 }
  0x58   :  { %1252 = vmatprep.subr.mxu1 %v1561_v0 }
  0x59   :  { %1253 = vmatpush3.msra.mxu1 %v1646_v14  ;;  %1162 = vmatmul.mubr.msk.f32.gmra.mxu0 %vm72_vm1, %v69_v26 }
  0x5a   :  { %1254 = vmatprep.subr.mxu1 %v1561_v0  ;;  %1231 = vmatprep.mubr.msk.f32.mxu0 %vm1562_vm0, %v1561_v0 }
  0x5b   :  { %1255 = vmatpush3.msra.mxu1 %v1652_v15 }
  0x5c   :  { %1256 = vmatprep.subr.mxu1 %v1561_v0 }
  0x5d   :  { %1257 = vmatpush3.msra.mxu1 %v1658_v16 }
  0x5e   :  { %1258 = vmatprep.subr.mxu1 %v1561_v0 }
  0x5f   :  { %1259 = vmatpush3.msra.mxu1 %v1664_v17 }
  0x60   :  { %1260 = vmatprep.subr.mxu1 %v1561_v0 }
  0x61   :  { %1261 = vmatpush3.msra.mxu1 %v1670_v18 }
  0x62   :  { %1262 = vmatprep.subr.mxu1 %v1561_v0 }
  0x63   :  { %1263 = vmatpush3.msra.mxu1 %v1676_v19 }
  0x64   :  { %1264 = vmatprep.subr.mxu1 %v1561_v0 }
  0x65   :  { %1265 = vmatpush3.msra.mxu1 %v1682_v20 }
  0x66   :  { %1304 = vmatprep.subr.mxu1 %v1561_v0 }
  0xec   :  { %v1154_v27 = vpop.f32.mrf.mxu0 }
  0xed   :  { %v210_v41 = vadd.f32 %v1154_v27, %v1749_v28 }
  0xee   :  { %v163_v29 = vpop.f32.mrf.mxu0 }
  0xef   :  { %v209_v30 = vadd.f32 %v1749_v28, %v163_v29 }
 0x106   :  { %v309_v31 = vpop.f32.mrf.mxu1 }
 0x107   :  { %v313_v32 = vadd.f32 %v309_v31, %v209_v30 }
 0x108   :  { %v1198_v33 = vpop.f32.mrf.mxu1 }
 0x109   :  { %1452 = vtanh.f32 %v313_v32 }
 0x111   :  { %v1786_v35 = vpop.f32.mrf.mxu0 }
 0x112   :  { %v212_v51 = vadd.f32 %v1786_v35, %v1749_v28 }
 0x113   :  { %v173_v36 = vpop.f32.mrf.mxu0 }
 0x114   :  { %v211_v46 = vadd.f32 %v1749_v28, %v173_v36 }
 0x115   :  { %v1788_v37 = vpop.f32.mrf.mxu0 }
 0x116   :  { %v1453_v34 = vpop.eup %1452  ;;  %v214_v61 = vadd.f32 %v1788_v37, %v1749_v28 }
 0x117   :  { %315 = vst [vmem:[#allocation10] sm:$0xff] %v1453_v34  ;;  %1232 = vmatmul.mubr.f32.vlgmr.msra.gmra.mxu0 %v1453_v34  ;;  %v1790_v38 = vpop.f32.mrf.mxu0 }
 0x118   :  { %1270 = vmatpush3.msra.mxu0 %v1604_v1  ;;  %1301 = vmatprep.mubr.msk.f32.mxu0 %vm1562_vm0, %v1561_v0  ;;  %v213_v56 = vadd.f32 %v1749_v28, %v1790_v38 }
 0x119   :  { %1271 = vmatprep.subr.mxu0 %v1561_v0  ;;  %v1792_v39 = vpop.f32.mrf.mxu0 }
 0x11a   :  { %1272 = vmatpush3.msra.mxu0 %v1606_v2  ;;  %v216_v7 = vadd.f32 %v1792_v39, %v1749_v28 }
 0x11b   :  { %1273 = vmatprep.subr.mxu0 %v1561_v0  ;;  %v1794_v40 = vpop.f32.mrf.mxu0 }
 0x11c   :  { %1274 = vmatpush3.msra.mxu0 %v1610_v3 }
 0x11d   :  { %1275 = vmatprep.subr.mxu0 %v1561_v0 }
 0x11e   :  { %1276 = vmatpush3.msra.mxu0 %v1614_v5 }
 0x11f   :  { %1277 = vmatprep.subr.mxu0 %v1561_v0 }
 0x120   :  { %1278 = vmatpush3.msra.mxu0 %v1618_v8 }
 0x121   :  { %1279 = vmatprep.subr.mxu0 %v1561_v0 }
 0x122   :  { %1280 = vmatpush3.msra.mxu0 %v1622_v10 }
 0x123   :  { %1281 = vmatprep.subr.mxu0 %v1561_v0 }
 0x124   :  { %1282 = vmatpush3.msra.mxu0 %v1628_v11 }
 0x125   :  { %1283 = vmatprep.subr.mxu0 %v1561_v0 }
 0x126   :  { %1284 = vmatpush3.msra.mxu0 %v1634_v12 }
 0x127   :  { %1285 = vmatprep.subr.mxu0 %v1561_v0 }
 0x128   :  { %1286 = vmatpush3.msra.mxu0 %v1640_v13 }
 0x129   :  { %1287 = vmatprep.subr.mxu0 %v1561_v0 }
 0x12a   :  { %1288 = vmatpush3.msra.mxu0 %v1646_v14 }
 0x12b   :  { %1289 = vmatprep.subr.mxu0 %v1561_v0 }
 0x12c   :  { %1290 = vmatpush3.msra.mxu0 %v1652_v15 }
 0x12d   :  { %1291 = vmatprep.subr.mxu0 %v1561_v0 }
 0x12e   :  { %1292 = vmatpush3.msra.mxu0 %v1658_v16 }
 0x12f   :  { %1293 = vmatprep.subr.mxu0 %v1561_v0 }
 0x130   :  { %1294 = vmatpush3.msra.mxu0 %v1664_v17 }
 0x131   :  { %1295 = vmatprep.subr.mxu0 %v1561_v0 }
 0x132   :  { %1296 = vmatpush3.msra.mxu0 %v1670_v18 }
 0x133   :  { %1297 = vmatprep.subr.mxu0 %v1561_v0 }
 0x134   :  { %1298 = vmatpush3.msra.mxu0 %v1676_v19 }
 0x135   :  { %1299 = vmatprep.subr.mxu0 %v1561_v0 }
 0x136   :  { %1300 = vmatpush3.msra.mxu0 %v1682_v20 }
 0x137   :  { %1339 = vmatprep.subr.mxu0 %v1561_v0 }
 0x1d7   :  { %v400_v42 = vpop.f32.mrf.mxu0 }
 0x1d8   :  { %v404_v43 = vadd.f32 %v400_v42, %v210_v41 }
 0x1d9   :  { %v1233_v44 = vpop.f32.mrf.mxu0 }
 0x1da   :  { %1454 = vtanh.f32 %v404_v43 }
 0x1e7   :  { %v1455_v45 = vpop.eup %1454 }
 0x1e8   :  { %407 = vst [vmem:[#allocation10 + $0x8] sm:$0xff] %v1455_v45  ;;  %1267 = vmatmul.mubr.f32.vlgmr.msra.gmra.mxu1 %v1455_v45 }
 0x1e9   :  { %1305 = vmatpush3.msra.mxu1 %v1604_v1  ;;  %1336 = vmatprep.mubr.msk.f32.mxu1 %vm1562_vm0, %v1561_v0 }
 0x1ea   :  { %1306 = vmatprep.subr.mxu1 %v1561_v0 }
 0x1eb   :  { %1307 = vmatpush3.msra.mxu1 %v1606_v2 }
 0x1ec   :  { %1308 = vmatprep.subr.mxu1 %v1561_v0 }
 0x1ed   :  { %1309 = vmatpush3.msra.mxu1 %v1610_v3 }
 0x1ee   :  { %1310 = vmatprep.subr.mxu1 %v1561_v0 }
 0x1ef   :  { %1311 = vmatpush3.msra.mxu1 %v1614_v5 }
 0x1f0   :  { %1312 = vmatprep.subr.mxu1 %v1561_v0 }
 0x1f1   :  { %1313 = vmatpush3.msra.mxu1 %v1618_v8 }
 0x1f2   :  { %1314 = vmatprep.subr.mxu1 %v1561_v0 }
 0x1f3   :  { %1315 = vmatpush3.msra.mxu1 %v1622_v10 }
 0x1f4   :  { %1316 = vmatprep.subr.mxu1 %v1561_v0 }
 0x1f5   :  { %1317 = vmatpush3.msra.mxu1 %v1628_v11 }
 0x1f6   :  { %1318 = vmatprep.subr.mxu1 %v1561_v0 }
 0x1f7   :  { %1319 = vmatpush3.msra.mxu1 %v1634_v12 }
 0x1f8   :  { %1320 = vmatprep.subr.mxu1 %v1561_v0 }
 0x1f9   :  { %1321 = vmatpush3.msra.mxu1 %v1640_v13 }
 0x1fa   :  { %1322 = vmatprep.subr.mxu1 %v1561_v0 }
 0x1fb   :  { %1323 = vmatpush3.msra.mxu1 %v1646_v14 }
 0x1fc   :  { %1324 = vmatprep.subr.mxu1 %v1561_v0 }
 0x1fd   :  { %1325 = vmatpush3.msra.mxu1 %v1652_v15 }
 0x1fe   :  { %1326 = vmatprep.subr.mxu1 %v1561_v0 }
 0x1ff   :  { %1327 = vmatpush3.msra.mxu1 %v1658_v16 }
 0x200   :  { %1328 = vmatprep.subr.mxu1 %v1561_v0 }
 0x201   :  { %1329 = vmatpush3.msra.mxu1 %v1664_v17 }
 0x202   :  { %1330 = vmatprep.subr.mxu1 %v1561_v0 }
 0x203   :  { %1331 = vmatpush3.msra.mxu1 %v1670_v18 }
 0x204   :  { %1332 = vmatprep.subr.mxu1 %v1561_v0 }
 0x205   :  { %1333 = vmatpush3.msra.mxu1 %v1676_v19 }
 0x206   :  { %1334 = vmatprep.subr.mxu1 %v1561_v0 }
 0x207   :  { %1335 = vmatpush3.msra.mxu1 %v1682_v20 }
 0x208   :  { %1374 = vmatprep.subr.mxu1 %v1561_v0 }
 0x2a8   :  { %v492_v47 = vpop.f32.mrf.mxu1 }
 0x2a9   :  { %v496_v48 = vadd.f32 %v492_v47, %v211_v46 }
 0x2aa   :  { %v1268_v49 = vpop.f32.mrf.mxu1 }
 0x2ab   :  { %1456 = vtanh.f32 %v496_v48 }
 0x2b8   :  { %v1457_v50 = vpop.eup %1456 }
 0x2b9   :  { %499 = vst [vmem:[#allocation10 + $0x10] sm:$0xff] %v1457_v50  ;;  %1302 = vmatmul.mubr.f32.vlgmr.msra.gmra.mxu0 %v1457_v50 }
 0x2ba   :  { %1340 = vmatpush3.msra.mxu0 %v1604_v1  ;;  %1371 = vmatprep.mubr.msk.f32.mxu0 %vm1562_vm0, %v1561_v0 }
 0x2bb   :  { %1341 = vmatprep.subr.mxu0 %v1561_v0 }
 0x2bc   :  { %1342 = vmatpush3.msra.mxu0 %v1606_v2 }
 0x2bd   :  { %1343 = vmatprep.subr.mxu0 %v1561_v0 }
 0x2be   :  { %1344 = vmatpush3.msra.mxu0 %v1610_v3 }
 0x2bf   :  { %1345 = vmatprep.subr.mxu0 %v1561_v0 }
 0x2c0   :  { %1346 = vmatpush3.msra.mxu0 %v1614_v5 }
 0x2c1   :  { %1347 = vmatprep.subr.mxu0 %v1561_v0 }
 0x2c2   :  { %1348 = vmatpush3.msra.mxu0 %v1618_v8 }
 0x2c3   :  { %1349 = vmatprep.subr.mxu0 %v1561_v0 }
 0x2c4   :  { %1350 = vmatpush3.msra.mxu0 %v1622_v10 }
 0x2c5   :  { %1351 = vmatprep.subr.mxu0 %v1561_v0 }
 0x2c6   :  { %1352 = vmatpush3.msra.mxu0 %v1628_v11 }
 0x2c7   :  { %1353 = vmatprep.subr.mxu0 %v1561_v0 }
 0x2c8   :  { %1354 = vmatpush3.msra.mxu0 %v1634_v12 }
 0x2c9   :  { %1355 = vmatprep.subr.mxu0 %v1561_v0 }
 0x2ca   :  { %1356 = vmatpush3.msra.mxu0 %v1640_v13 }
 0x2cb   :  { %1357 = vmatprep.subr.mxu0 %v1561_v0 }
 0x2cc   :  { %1358 = vmatpush3.msra.mxu0 %v1646_v14 }
 0x2cd   :  { %1359 = vmatprep.subr.mxu0 %v1561_v0 }
 0x2ce   :  { %1360 = vmatpush3.msra.mxu0 %v1652_v15 }
 0x2cf   :  { %1361 = vmatprep.subr.mxu0 %v1561_v0 }
 0x2d0   :  { %1362 = vmatpush3.msra.mxu0 %v1658_v16 }
 0x2d1   :  { %1363 = vmatprep.subr.mxu0 %v1561_v0 }
 0x2d2   :  { %1364 = vmatpush3.msra.mxu0 %v1664_v17 }
 0x2d3   :  { %1365 = vmatprep.subr.mxu0 %v1561_v0 }
 0x2d4   :  { %1366 = vmatpush3.msra.mxu0 %v1670_v18 }
 0x2d5   :  { %1367 = vmatprep.subr.mxu0 %v1561_v0 }
 0x2d6   :  { %1368 = vmatpush3.msra.mxu0 %v1676_v19 }
 0x2d7   :  { %1369 = vmatprep.subr.mxu0 %v1561_v0 }
 0x2d8   :  { %1370 = vmatpush3.msra.mxu0 %v1682_v20 }
 0x2d9   :  { %1409 = vmatprep.subr.mxu0 %v1561_v0 }
 0x379   :  { %v584_v52 = vpop.f32.mrf.mxu0 }
 0x37a   :  { %v588_v53 = vadd.f32 %v584_v52, %v212_v51 }
 0x37b   :  { %v1303_v54 = vpop.f32.mrf.mxu0 }
 0x37c   :  { %1458 = vtanh.f32 %v588_v53 }
 0x389   :  { %v1459_v55 = vpop.eup %1458 }
 0x38a   :  { %591 = vst [vmem:[#allocation10 + $0x18] sm:$0xff] %v1459_v55  ;;  %1337 = vmatmul.mubr.f32.vlgmr.msra.gmra.mxu1 %v1459_v55 }
 0x38b   :  { %1375 = vmatpush3.msra.mxu1 %v1604_v1  ;;  %1406 = vmatprep.mubr.msk.f32.mxu1 %vm1562_vm0, %v1561_v0 }
 0x38c   :  { %1376 = vmatprep.subr.mxu1 %v1561_v0 }
 0x38d   :  { %1377 = vmatpush3.msra.mxu1 %v1606_v2 }
 0x38e   :  { %1378 = vmatprep.subr.mxu1 %v1561_v0 }
 0x38f   :  { %1379 = vmatpush3.msra.mxu1 %v1610_v3 }
 0x390   :  { %1380 = vmatprep.subr.mxu1 %v1561_v0 }
 0x391   :  { %1381 = vmatpush3.msra.mxu1 %v1614_v5 }
 0x392   :  { %1382 = vmatprep.subr.mxu1 %v1561_v0 }
 0x393   :  { %1383 = vmatpush3.msra.mxu1 %v1618_v8 }
 0x394   :  { %1384 = vmatprep.subr.mxu1 %v1561_v0 }
 0x395   :  { %1385 = vmatpush3.msra.mxu1 %v1622_v10 }
 0x396   :  { %1386 = vmatprep.subr.mxu1 %v1561_v0 }
 0x397   :  { %1387 = vmatpush3.msra.mxu1 %v1628_v11 }
 0x398   :  { %1388 = vmatprep.subr.mxu1 %v1561_v0 }
 0x399   :  { %1389 = vmatpush3.msra.mxu1 %v1634_v12 }
 0x39a   :  { %1390 = vmatprep.subr.mxu1 %v1561_v0 }
 0x39b   :  { %1391 = vmatpush3.msra.mxu1 %v1640_v13 }
 0x39c   :  { %1392 = vmatprep.subr.mxu1 %v1561_v0 }
 0x39d   :  { %1393 = vmatpush3.msra.mxu1 %v1646_v14 }
 0x39e   :  { %1394 = vmatprep.subr.mxu1 %v1561_v0 }
 0x39f   :  { %1395 = vmatpush3.msra.mxu1 %v1652_v15 }
 0x3a0   :  { %1396 = vmatprep.subr.mxu1 %v1561_v0 }
 0x3a1   :  { %1397 = vmatpush3.msra.mxu1 %v1658_v16 }
 0x3a2   :  { %1398 = vmatprep.subr.mxu1 %v1561_v0 }
 0x3a3   :  { %1399 = vmatpush3.msra.mxu1 %v1664_v17 }
 0x3a4   :  { %1400 = vmatprep.subr.mxu1 %v1561_v0 }
 0x3a5   :  { %1401 = vmatpush3.msra.mxu1 %v1670_v18 }
 0x3a6   :  { %1402 = vmatprep.subr.mxu1 %v1561_v0 }
 0x3a7   :  { %1403 = vmatpush3.msra.mxu1 %v1676_v19 }
 0x3a8   :  { %1404 = vmatprep.subr.mxu1 %v1561_v0 }
 0x3a9   :  { %1405 = vmatpush3.msra.mxu1 %v1682_v20 }
 0x44a   :  { %v676_v57 = vpop.f32.mrf.mxu1 }
 0x44b   :  { %v680_v58 = vadd.f32 %v676_v57, %v213_v56 }
 0x44c   :  { %v1338_v59 = vpop.f32.mrf.mxu1 }
 0x44d   :  { %1460 = vtanh.f32 %v680_v58 }
 0x45a   :  { %v1461_v60 = vpop.eup %1460 }
 0x45b   :  { %683 = vst [vmem:[#allocation10 + $0x20] sm:$0xff] %v1461_v60  ;;  %1372 = vmatmul.mubr.f32.vlgmr.msra.gmra.mxu0 %v1461_v60 }
 0x45c   :  { %1410 = vmatpush3.msra.mxu0 %v1604_v1  ;;  %1441 = vmatprep.mubr.msk.f32.mxu0 %vm1562_vm0, %v1561_v0 }
 0x45d   :  { %1411 = vmatprep.subr.mxu0 %v1561_v0 }
 0x45e   :  { %1412 = vmatpush3.msra.mxu0 %v1606_v2 }
 0x45f   :  { %1413 = vmatprep.subr.mxu0 %v1561_v0 }
 0x460   :  { %1414 = vmatpush3.msra.mxu0 %v1610_v3  ;;  %v215_v3 = vadd.f32 %v1749_v28, %v1794_v40 }
 0x461   :  { %1415 = vmatprep.subr.mxu0 %v1561_v0 }
 0x462   :  { %1416 = vmatpush3.msra.mxu0 %v1614_v5 }
 0x463   :  { %1417 = vmatprep.subr.mxu0 %v1561_v0 }
 0x464   :  { %1418 = vmatpush3.msra.mxu0 %v1618_v8 }
 0x465   :  { %1419 = vmatprep.subr.mxu0 %v1561_v0 }
 0x466   :  { %1420 = vmatpush3.msra.mxu0 %v1622_v10 }
 0x467   :  { %1421 = vmatprep.subr.mxu0 %v1561_v0 }
 0x468   :  { %1422 = vmatpush3.msra.mxu0 %v1628_v11 }
 0x469   :  { %1423 = vmatprep.subr.mxu0 %v1561_v0 }
 0x46a   :  { %1424 = vmatpush3.msra.mxu0 %v1634_v12 }
 0x46b   :  { %1425 = vmatprep.subr.mxu0 %v1561_v0 }
 0x46c   :  { %1426 = vmatpush3.msra.mxu0 %v1640_v13 }
 0x46d   :  { %1427 = vmatprep.subr.mxu0 %v1561_v0 }
 0x46e   :  { %1428 = vmatpush3.msra.mxu0 %v1646_v14 }
 0x46f   :  { %1429 = vmatprep.subr.mxu0 %v1561_v0 }
 0x470   :  { %1430 = vmatpush3.msra.mxu0 %v1652_v15 }
 0x471   :  { %1431 = vmatprep.subr.mxu0 %v1561_v0 }
 0x472   :  { %1432 = vmatpush3.msra.mxu0 %v1658_v16 }
 0x473   :  { %1433 = vmatprep.subr.mxu0 %v1561_v0 }
 0x474   :  { %1434 = vmatpush3.msra.mxu0 %v1664_v17 }
 0x475   :  { %1435 = vmatprep.subr.mxu0 %v1561_v0 }
 0x476   :  { %1436 = vmatpush3.msra.mxu0 %v1670_v18 }
 0x477   :  { %1437 = vmatprep.subr.mxu0 %v1561_v0 }
 0x478   :  { %1438 = vmatpush3.msra.mxu0 %v1676_v19 }
 0x479   :  { %1439 = vmatprep.subr.mxu0 %v1561_v0 }
 0x47a   :  { %1440 = vmatpush3.msra.mxu0 %v1682_v20 }
 0x51b   :  { %v768_v62 = vpop.f32.mrf.mxu0 }
 0x51c   :  { %v772_v63 = vadd.f32 %v768_v62, %v214_v61 }
 0x51d   :  { %v1373_v1 = vpop.f32.mrf.mxu0 }
 0x51e   :  { %1462 = vtanh.f32 %v772_v63 }
 0x52b   :  { %v1463_v2 = vpop.eup %1462 }
 0x52c   :  { %775 = vst [vmem:[#allocation10 + $0x28] sm:$0xff] %v1463_v2  ;;  %1407 = vmatmul.mubr.f32.vlgmr.msra.gmra.mxu1 %v1463_v2 }
 0x5ec   :  { %v860_v4 = vpop.f32.mrf.mxu1 }
 0x5ed   :  { %v864_v5 = vadd.f32 %v860_v4, %v215_v3 }
 0x5ee   :  { %v1408_v6 = vpop.f32.mrf.mxu1 }
 0x5ef   :  { %1464 = vtanh.f32 %v864_v5 }
 0x5fc   :  { %v1465_v0 = vpop.eup %1464 }
 0x5fd   :  { %867 = vst [vmem:[#allocation10 + $0x30] sm:$0xff] %v1465_v0  ;;  %1442 = vmatmul.mubr.f32.vlgmr.msra.gmra.mxu0 %v1465_v0 }
 0x6bd   :  { %v952_v8 = vpop.f32.mrf.mxu0 }
 0x6be   :  { %v956_v9 = vadd.f32 %v952_v8, %v216_v7 }
 0x6bf   :  { %v1443_v10 = vpop.f32.mrf.mxu0 }
 0x6c0   :  { %1466 = vtanh.f32 %v956_v9 }
 0x6cd   :  { %v1467_v11 = vpop.eup %1466 }
 0x6ce   :  { %959 = vst [vmem:[#allocation10 + $0x38] sm:$0xff] %v1467_v11 }
 0x6cf   :  { %1539 = shalt.err (!%p1536_p5)
}
 0x6d0   :  { %972 = dma.vmem_to_hbm [thread:$0]  %s967_s5, 1024, %s1952_s4, [#allocation9], %s1557_s18, %s1557_s18, %s1558_s19  }
 0x6d1   :  { %1554 = dma.done.wait [#allocation9], 1024  }
 0x6d2   :  { %1555 = vsyncadd [#allocation9], 4294966272 }
 0x6d3   :  { %976 = vsyncpa [#allocation8], 1 }
 0x6d4   :  { %977 = vsyncpa [#allocation9], 1 }
 0x6d5   :  { %978 = vsyncmov [#allocation4] }
 0x6d8   :  { %s979_s9 = vpop.sfrf %978 }
 0x6d9   :  { %p1000_p6 = scmp.ne.s32.totalorder %s979_s9, 0 }
 0x6db   :  { %983 = shalt.err (%p1000_p6)  }
 0x6dc   :  { %985 = vsyncmov [#allocation4 + $0x1] }
 0x6df   :  { %s986_s10 = vpop.sfrf %985 }
 0x6e0   :  { %p1001_p7 = scmp.ne.s32.totalorder %s986_s10, 0 }
 0x6e2   :  { %990 = shalt.err (%p1001_p7)  }

</bundles_post_ra>
